<compile_context>
chip_gen: v6e
topology: v6e:2x2x1
jax: 0.10.0
libtpu: 0.0.40
codegen_flags: <defaults>
</compile_context>

<pallas_src>
import functools

import jax
import jax.numpy as jnp
from jax.experimental import pallas as pl
from jax.experimental.pallas import tpu as pltpu


def _dueling_kernel(x_ref, w1_ref, wpack_ref, bpack_ref, out_ref):
    """Fused fc1 -> relu -> fc2 -> relu -> [all 4 heads as one matmul]."""
    n_hidden = w1_ref.shape[1]

    # fc1 (+bias, ReLU).  Matmul operands bf16, accumulate f32, elementwise f32.
    x = x_ref[...].astype(jnp.bfloat16)
    b1 = bpack_ref[:, :n_hidden]                       # (1, n_hidden) f32
    h1 = jnp.dot(x, w1_ref[...], preferred_element_type=jnp.float32) + b1
    h1 = jnp.maximum(h1, 0.0).astype(jnp.bfloat16)

    # fc2 (+bias, ReLU).  w2 is the first n_hidden columns of the packed slab.
    w2 = wpack_ref[:, :n_hidden]                       # (n_hidden, n_hidden) bf16
    b2 = bpack_ref[:, n_hidden:2 * n_hidden]           # (1, n_hidden) f32
    h2 = jnp.dot(h1, w2, preferred_element_type=jnp.float32) + b2
    h2 = jnp.maximum(h2, 0.0).astype(jnp.bfloat16)

    # All four heads fused into one lane-dense (128-wide, zero-padded) matmul.
    wh = wpack_ref[:, n_hidden:]                       # (n_hidden, 128) bf16
    bh = bpack_ref[:, 2 * n_hidden:]                   # (1, 128) f32
    out_ref[...] = jnp.dot(h2, wh, preferred_element_type=jnp.float32) + bh


@functools.partial(jax.jit, static_argnames=("output_n", "batch_tile"))
def _forward_packed(state, w1, wpack, bpack, *, output_n, batch_tile=512):
    B, input_n = state.shape
    n_hidden = w1.shape[1]
    head_pad = wpack.shape[1] - n_hidden               # lane-dense head width (128)

    # Batch tiling: multiple of 8 sublanes, <= batch_tile rows, padded if needed.
    B_pad = max(8, -(-B // 8) * 8)
    B_tile = min(B_pad, batch_tile)
    B_pad = -(-B_pad // B_tile) * B_tile
    state_p = state if B_pad == B else jnp.pad(state, ((0, B_pad - B), (0, 0)))

    grid = (B_pad // B_tile,)

    out = pl.pallas_call(
        _dueling_kernel,
        out_shape=jax.ShapeDtypeStruct((B_pad, head_pad), jnp.float32),
        grid_spec=pltpu.PrefetchScalarGridSpec(
            num_scalar_prefetch=0,
            grid=grid,
            in_specs=[
                # state: tiled over batch
                pl.BlockSpec((B_tile, input_n), lambda i: (i, 0)),
                # weights / biases: same block every step -> VMEM resident
                pl.BlockSpec((input_n, n_hidden), lambda i: (0, 0)),
                pl.BlockSpec((n_hidden, n_hidden + head_pad), lambda i: (0, 0)),
                pl.BlockSpec((1, 2 * n_hidden + head_pad), lambda i: (0, 0)),
            ],
            out_specs=pl.BlockSpec((B_tile, head_pad), lambda i: (i, 0)),
        ),
        compiler_params=pltpu.CompilerParams(
            dimension_semantics=("parallel",)),
    )(state_p, w1, wpack, bpack)

    out = out[:B]
    act_value = out[:, 0:1]
    act_adv = out[:, 1:1 + output_n]
    pen_value = out[:, 1 + output_n:2 + output_n]
    pen_adv = out[:, 2 + output_n:4 + output_n]
    return act_value, act_adv, pen_value, pen_adv


def prepare_packed_params(params):
    """Pack 12 parameter arrays into 3 (bf16 weights, f32 biases). Call ONCE."""
    n_hidden = params["w2"].shape[0]
    output_n = params["waa"].shape[1]

    head_w = jnp.concatenate(
        [params["wav"], params["waa"], params["wpv"], params["wpa"]], axis=1)
    head_b = jnp.concatenate(
        [params["bav"], params["baa"], params["bpv"], params["bpa"]], axis=1)
    head_n = head_w.shape[1]                               # 1 + output_n + 1 + 2
    head_pad = 128 * pl.cdiv(head_n, 128)                  # lane-dense width
    head_w = jnp.pad(head_w, ((0, 0), (0, head_pad - head_n)))
    head_b = jnp.pad(head_b, ((0, 0), (0, head_pad - head_n)))

    w1 = params["w1"].astype(jnp.bfloat16)
    wpack = jnp.concatenate([params["w2"], head_w], axis=1).astype(jnp.bfloat16)
    bpack = jnp.concatenate([params["b1"], params["b2"], head_b],
                            axis=1).astype(jnp.float32)
    # TODO(synk): for a tight inference loop, keep these VMEM-resident across
    # calls via a cross-pallas_call prefetch (P10) instead of re-DMAing per call.
    return {"w1": w1, "wpack": wpack, "bpack": bpack,
            "output_n": int(output_n), "n_hidden": int(n_hidden)}


def dueling_ddqn_double_out_forward(state, packed, *, batch_tile=512):
    return _forward_packed(state, packed["w1"], packed["wpack"], packed["bpack"],
                           output_n=packed["output_n"], batch_tile=batch_tile)


def init_params(key, input_n, output_n, n_hidden):
    """PyTorch-nn.Linear-style init (uniform +-1/sqrt(fan_in)), f32 master copy."""
    def linear(k, fan_in, fan_out):
        kw, kb = jax.random.split(k)
        bound = 1.0 / jnp.sqrt(jnp.float32(fan_in))
        w = jax.random.uniform(kw, (fan_in, fan_out), jnp.float32, -bound, bound)
        b = jax.random.uniform(kb, (1, fan_out), jnp.float32, -bound, bound)
        return w, b

    keys = jax.random.split(key, 6)
    w1, b1 = linear(keys[0], input_n, n_hidden)
    w2, b2 = linear(keys[1], n_hidden, n_hidden)
    wav, bav = linear(keys[2], n_hidden, 1)
    waa, baa = linear(keys[3], n_hidden, output_n)
    wpv, bpv = linear(keys[4], n_hidden, 1)
    wpa, bpa = linear(keys[5], n_hidden, 2)
    return {"w1": w1, "b1": b1, "w2": w2, "b2": b2,
            "wav": wav, "bav": bav, "waa": waa, "baa": baa,
            "wpv": wpv, "bpv": bpv, "wpa": wpa, "bpa": bpa}


def reference_forward_bf16(state, params):
    """Plain-JAX reference mimicking the kernel's bf16-operand / f32-accum math."""
    bf = jnp.bfloat16
    x = state.astype(bf)
    h1 = jnp.maximum(
        jnp.dot(x, params["w1"].astype(bf),
                preferred_element_type=jnp.float32) + params["b1"], 0.0).astype(bf)
    h2 = jnp.maximum(
        jnp.dot(h1, params["w2"].astype(bf),
                preferred_element_type=jnp.float32) + params["b2"], 0.0).astype(bf)

    def head(w, b):
        return jnp.dot(h2, w.astype(bf),
                       preferred_element_type=jnp.float32) + b

    return (head(params["wav"], params["bav"]),
            head(params["waa"], params["baa"]),
            head(params["wpv"], params["bpv"]),
            head(params["wpa"], params["bpa"]))


def reference_forward_f32(state, params):
    h1 = jnp.maximum(state @ params["w1"] + params["b1"], 0.0)
    h2 = jnp.maximum(h1 @ params["w2"] + params["b2"], 0.0)
    return (h2 @ params["wav"] + params["bav"],
            h2 @ params["waa"] + params["baa"],
            h2 @ params["wpv"] + params["bpv"],
            h2 @ params["wpa"] + params["bpa"])


if __name__ == "__main__":
    # Small, forward-consistent shapes: batch=8, input_n=32, output_n=4 actions,
    # n_hidden=256 (module default).
    B, input_n, output_n, n_hidden = 8, 32, 4, 256

    key = jax.random.PRNGKey(0)
    k_params, k_state = jax.random.split(key)

    params = init_params(k_params, input_n, output_n, n_hidden)
    state = jax.random.normal(k_state, (B, input_n), dtype=jnp.float32)

    packed = prepare_packed_params(params)
    outs = dueling_ddqn_double_out_forward(state, packed)
    outs = jax.block_until_ready(outs)

    names = ["act_value", "act_advantages", "pen_value", "pen_advantages"]
    expected_shapes = [(B, 1), (B, output_n), (B, 1), (B, 2)]

    # Tight check vs a reference that uses the same bf16-operand math.
    refs_bf16 = reference_forward_bf16(state, params)
    for name, shp, o, r in zip(names, expected_shapes, outs, refs_bf16):
        assert o.shape == shp, (name, o.shape, shp)
        assert jnp.allclose(o, r, atol=1e-3, rtol=1e-3), f"{name}: bf16 ref mismatch"

    # Loose sanity check vs full-f32 math (bf16 weight rounding only).
    refs_f32 = reference_forward_f32(state, params)
    for name, o, r in zip(names, outs, refs_f32):
        assert jnp.allclose(o, r, atol=5e-2, rtol=5e-2), f"{name}: f32 ref mismatch"

    print("KERNEL_OK")
</pallas_src>

<mosaic_0001>
module attributes {stable_mosaic.version = 11 : i64} {
  func.func @_dueling_kernel(%arg0: i32, %arg1: memref<8x32xf32, #tpu.memory_space<vmem>>, %arg2: memref<32x256xbf16, #tpu.memory_space<vmem>>, %arg3: memref<256x384xbf16, #tpu.memory_space<vmem>>, %arg4: memref<1x640xf32, #tpu.memory_space<vmem>>, %arg5: memref<8x128xf32, #tpu.memory_space<vmem>>) attributes {dimension_semantics = [#tpu.dimension_semantics<parallel>], iteration_bounds = array<i64: 1>, scalar_prefetch = 0 : i64, scratch_operands = 0 : i64, tpu.core_type = #tpu.core_type<tc>, window_params = [{transform_indices = @transform_0, window_bounds = array<i64: 8, 32>}, {pipeline_mode = #tpu.pipeline_mode<synchronous>, transform_indices = @transform_1, window_bounds = array<i64: 32, 256>}, {pipeline_mode = #tpu.pipeline_mode<synchronous>, transform_indices = @transform_2, window_bounds = array<i64: 256, 384>}, {pipeline_mode = #tpu.pipeline_mode<synchronous>, transform_indices = @transform_3, window_bounds = array<i64: 1, 640>}, {transform_indices = @transform_4, window_bounds = array<i64: 8, 128>}]} {
    %c0 = arith.constant 0 : index
    %c0_0 = arith.constant 0 : index
    %0 = vector.load %arg1[%c0, %c0_0] : memref<8x32xf32, #tpu.memory_space<vmem>>, vector<8x32xf32>
    %1 = arith.truncf %0 : vector<8x32xf32> to vector<8x32xbf16>
    %c0_1 = arith.constant 0 : index
    %c0_2 = arith.constant 0 : index
    %2 = vector.load %arg4[%c0_1, %c0_2] : memref<1x640xf32, #tpu.memory_space<vmem>>, vector<1x256xf32>
    %c0_3 = arith.constant 0 : index
    %c0_4 = arith.constant 0 : index
    %3 = vector.load %arg2[%c0_3, %c0_4] : memref<32x256xbf16, #tpu.memory_space<vmem>>, vector<32x256xbf16>
    %cst = arith.constant dense<0.000000e+00> : vector<8x256xf32>
    %4 = tpu.matmul %1, %3, %cst {dimension_numbers = #tpu.dot_dimension_numbers<[1], [0], [0], [1], [0, 0, 1, 1], [], []>} : vector<8x32xbf16>, vector<32x256xbf16>, vector<8x256xf32> -> vector<8x256xf32>
    %5 = vector.broadcast %2 : vector<1x256xf32> to vector<8x256xf32>
    %6 = arith.addf %4, %5 : vector<8x256xf32>
    %cst_5 = arith.constant 0.000000e+00 : f32
    %7 = vector.broadcast %cst_5 : f32 to vector<8x256xf32>
    %8 = arith.maximumf %6, %7 : vector<8x256xf32>
    %9 = arith.truncf %8 : vector<8x256xf32> to vector<8x256xbf16>
    %c0_6 = arith.constant 0 : index
    %c0_7 = arith.constant 0 : index
    %10 = vector.load %arg3[%c0_6, %c0_7] : memref<256x384xbf16, #tpu.memory_space<vmem>>, vector<256x256xbf16>
    %c0_8 = arith.constant 0 : index
    %c256 = arith.constant 256 : index
    %11 = vector.load %arg4[%c0_8, %c256] : memref<1x640xf32, #tpu.memory_space<vmem>>, vector<1x256xf32>
    %cst_9 = arith.constant dense<0.000000e+00> : vector<8x256xf32>
    %12 = tpu.matmul %9, %10, %cst_9 {dimension_numbers = #tpu.dot_dimension_numbers<[1], [0], [0], [1], [0, 0, 1, 1], [], []>} : vector<8x256xbf16>, vector<256x256xbf16>, vector<8x256xf32> -> vector<8x256xf32>
    %13 = vector.broadcast %11 : vector<1x256xf32> to vector<8x256xf32>
    %14 = arith.addf %12, %13 : vector<8x256xf32>
    %cst_10 = arith.constant 0.000000e+00 : f32
    %15 = vector.broadcast %cst_10 : f32 to vector<8x256xf32>
    %16 = arith.maximumf %14, %15 : vector<8x256xf32>
    %17 = arith.truncf %16 : vector<8x256xf32> to vector<8x256xbf16>
    %c0_11 = arith.constant 0 : index
    %c256_12 = arith.constant 256 : index
    %18 = vector.load %arg3[%c0_11, %c256_12] : memref<256x384xbf16, #tpu.memory_space<vmem>>, vector<256x128xbf16>
    %c0_13 = arith.constant 0 : index
    %c512 = arith.constant 512 : index
    %19 = vector.load %arg4[%c0_13, %c512] : memref<1x640xf32, #tpu.memory_space<vmem>>, vector<1x128xf32>
    %cst_14 = arith.constant dense<0.000000e+00> : vector<8x128xf32>
    %20 = tpu.matmul %17, %18, %cst_14 {dimension_numbers = #tpu.dot_dimension_numbers<[1], [0], [0], [1], [0, 0, 1, 1], [], []>} : vector<8x256xbf16>, vector<256x128xbf16>, vector<8x128xf32> -> vector<8x128xf32>
    %21 = vector.broadcast %19 : vector<1x128xf32> to vector<8x128xf32>
    %22 = arith.addf %20, %21 : vector<8x128xf32>
    %c0_15 = arith.constant 0 : index
    %c0_16 = arith.constant 0 : index
    %23 = vector.load %arg5[%c0_15, %c0_16] : memref<8x128xf32, #tpu.memory_space<vmem>>, vector<8x128xf32>
    tpu.vector_store %arg5[%c0_15, %c0_16], %22 {strides = array<i32>} : memref<8x128xf32, #tpu.memory_space<vmem>>, vector<8x128xf32>,
    return
  }
  func.func @transform_0(%arg0: i32) -> (i32, i32) {
    %c0_i32 = arith.constant 0 : i32
    %c0_i32_0 = arith.constant 0 : i32
    return %arg0, %c0_i32 : i32, i32
  }
  func.func @transform_1(%arg0: i32) -> (i32, i32) {
    %c0_i32 = arith.constant 0 : i32
    %c0_i32_0 = arith.constant 0 : i32
    %c0_i32_1 = arith.constant 0 : i32
    return %c0_i32, %c0_i32_0 : i32, i32
  }
  func.func @transform_2(%arg0: i32) -> (i32, i32) {
    %c0_i32 = arith.constant 0 : i32
    %c0_i32_0 = arith.constant 0 : i32
    %c0_i32_1 = arith.constant 0 : i32
    return %c0_i32, %c0_i32_0 : i32, i32
  }
  func.func @transform_3(%arg0: i32) -> (i32, i32) {
    %c0_i32 = arith.constant 0 : i32
    %c0_i32_0 = arith.constant 0 : i32
    %c0_i32_1 = arith.constant 0 : i32
    return %c0_i32, %c0_i32_0 : i32, i32
  }
  func.func @transform_4(%arg0: i32) -> (i32, i32) {
    %c0_i32 = arith.constant 0 : i32
    %c0_i32_0 = arith.constant 0 : i32
    return %arg0, %c0_i32 : i32, i32
  }
}

</mosaic_0001>

<bundles_post_ra>
// kernel: _forward_packed.1
= control target key start
LH: loop header
LB: loop body
LE: loop exit
PB: predicated region body
PF: predicated region fallthrough
CT: control target
= control target key end

     0   :  { %9 = vsyncpa [#allocation3], 0  ;;  %s847_s0 = inlined_call_operand.hbm [shape: f32[8,32], index: 0, kind: input, shape index: {}]   ;;  %s848_s1 = inlined_call_operand.hbm [shape: bf16[32,256], index: 1, kind: input, shape index: {}]   ;;  %s849_s2 = inlined_call_operand.hbm [shape: bf16[256,384], index: 2, kind: input, shape index: {}]   ;;  %s850_s3 = inlined_call_operand.vmem [shape: f32[1,640], index: 3, kind: input, shape index: {}]   ;;  %s851_s4 = inlined_call_operand.vmem [shape: f32[8,128], index: 4, kind: output, shape index: {}]  }
   0x1   :  { %10 = vsyncpa [#allocation5], 0  ;;  %s793_s15 = smov [#allocation4]  }
   0x2   :  { %s26_s16 = sshll.u32 %s793_s15, 4  ;;  %s27_s16 = int_to_ptr.vmem [resolvable:$true] %s26_s16 }
   0x3   :  { %s737_s17 = scalar_lea.vmem %s27_s16, 512  ;;  %p742_p1 = scmp.lt.s32.totalorder %s27_s16, %s27_s16 }
   0x4   :  { %p738_p0 = scmp.ne.s32.totalorder %s27_s16, %s737_s17  ;;  %p743_p2 = scmp.lt.s32.totalorder %s737_s17, %s737_s17 }
   0x6   :  { %p744_p3 = por %p743_p2, %p742_p1 }
   0x8   :  { %p745_p4 = pnand %p744_p3, %p738_p0 }
   0xa   :  { %748 = shalt.err (!%p745_p4)
}
   0xb   :  { %s794_s18 = smov 128   ;;  %s795_s19 = smov 8  }
   0xc   :  { %32 = dma.hbm_to_vmem [thread:$0]  %s848_s1, 512, %s27_s16, [#allocation5], %s794_s18, %s794_s18, %s795_s19  }
   0xd   :  { %s796_s22 = smov [#allocation2]   ;;  %s797_s24 = smov [#allocation6]  }
   0xe   :  { %s17_s23 = sshll.u32 %s796_s22, 4  ;;  %s38_s25 = sshll.u32 %s797_s24, 4  ;;  %s18_s23 = int_to_ptr.vmem [resolvable:$true] %s17_s23  ;;  %s39_s25 = int_to_ptr.vmem [resolvable:$true] %s38_s25 }
   0xf   :  { %s757_s26 = scalar_lea.vmem %s18_s23, 128  ;;  %p762_p6 = scmp.lt.s32.totalorder %s18_s23, %s18_s23 }
  0x10   :  { %p758_p5 = scmp.ne.s32.totalorder %s18_s23, %s757_s26  ;;  %p763_p7 = scmp.lt.s32.totalorder %s757_s26, %s757_s26 }
  0x12   :  { %p764_p8 = por %p763_p7, %p762_p6 }
  0x14   :  { %p765_p9 = pnand %p764_p8, %p758_p5 }
  0x16   :  { %768 = shalt.err (!%p765_p9)
}
  0x17   :  { %20 = dma.hbm_to_vmem [thread:$0]  %s847_s0, 128, %s18_s23, [#allocation3]  }
  0x18   :  { %s777_s29 = scalar_lea.vmem %s39_s25, 6144  ;;  %p782_p11 = scmp.lt.s32.totalorder %s39_s25, %s39_s25 }
  0x19   :  { %p778_p10 = scmp.ne.s32.totalorder %s39_s25, %s777_s29  ;;  %p783_p12 = scmp.lt.s32.totalorder %s777_s29, %s777_s29 }
  0x1b   :  { %p784_p13 = por %p783_p12, %p782_p11 }
  0x1d   :  { %p785_p0 = pnand %p784_p13, %p778_p10 }
  0x1f   :  { %788 = shalt.err (!%p785_p0)
}
  0x20   :  { %s798_s1 = smov 192   ;;  %s799_s30 = smov 12  }
  0x21   :  { %44 = dma.hbm_to_vmem [thread:$0]  %s849_s2, 6144, %s39_s25, [#allocation5], %s798_s1, %s798_s1, %s799_s30  }
  0x22   :  { %789 = dma.done.wait [#allocation3], 128  }
  0x23   :  { %790 = vsyncadd [#allocation3], 4294967168 }
  0x24   :  { %791 = dma.done.wait [#allocation5], 6656  }
  0x25   :  { %792 = vsyncadd [#allocation5], 4294960640  ;;  %v800_v0 = vmov 0   ;;  %v659_v1 = vld [vmem:[#allocation4 + $0x14] ss:$8 sps:$4 sm:$0xff]   ;;  %vm95_vm0 = vcmask 261120   ;;  %v65_v51 = vlaneseq }
  0x26   :  { %131 = vmatprep.mubr.bf16.mxu0 %v800_v0  ;;  %v661_v2 = vld [vmem:[#allocation4 + $0x10] ss:$8 sps:$4 sm:$0xff]   ;;  %111 = vmatprep.subr.bf16.mxu0 %v659_v1  ;;  %v662_v3 = vld [vmem:[#allocation4 + $0x4] ss:$8 sps:$4 sm:$0xff]   ;;  %v664_v4 = vld [vmem:[#allocation4] ss:$8 sps:$4 sm:$0xff]  }
  0x27   :  { %v57_v5 = vld [vmem:[#allocation2] sm:$0xff]  ;;  %112 = vmatpush1.bf16.msra.mxu0 %v661_v2  ;;  %v667_v7 = vld [vmem:[#allocation6 + $0xa8] ss:$12 sps:$4 sm:$0xff]   ;;  %v674_v13 = vld [vmem:[#allocation6 + $0x64] ss:$12 sps:$4 sm:$0xff]   ;;  %v66_v52 = vshrl.u32 %v65_v51, 7 }
  0x28   :  { %v665_v6 = vld [vmem:[#allocation6 + $0xac] ss:$12 sps:$4 sm:$0xff]   ;;  %113 = vmatprep.subr.bf16.mxu0 %v662_v3  ;;  %v668_v8 = vld [vmem:[#allocation6 + $0x94] ss:$12 sps:$4 sm:$0xff]   ;;  %v58_v9 = vpack.c.bf16 %v57_v5, %v57_v5  ;;  %v670_v10 = vld [vmem:[#allocation6 + $0x90] ss:$12 sps:$4 sm:$0xff]  }
  0x29   :  { %348 = vmatprep.subr.bf16.mxu1 %v665_v6  ;;  %v671_v11 = vld [vmem:[#allocation6 + $0x7c] ss:$12 sps:$4 sm:$0xff]   ;;  %v673_v12 = vld [vmem:[#allocation6 + $0x78] ss:$12 sps:$4 sm:$0xff]   ;;  %v676_v14 = vld [vmem:[#allocation6 + $0x60] ss:$12 sps:$4 sm:$0xff]  }
  0x2a   :  { %349 = vmatpush1.bf16.msra.mxu1 %v667_v7  ;;  %v677_v15 = vld [vmem:[#allocation6 + $0x4c] ss:$12 sps:$4 sm:$0xff]   ;;  %v679_v16 = vld [vmem:[#allocation6 + $0x48] ss:$12 sps:$4 sm:$0xff]   ;;  %v682_v18 = vld [vmem:[#allocation6 + $0x30] ss:$12 sps:$4 sm:$0xff]  }
  0x2b   :  { %114 = vmatpush1.bf16.msra.mxu0 %v664_v4  ;;  %350 = vmatprep.subr.bf16.mxu1 %v668_v8  ;;  %v680_v17 = vld [vmem:[#allocation6 + $0x34] ss:$12 sps:$4 sm:$0xff]   ;;  %v683_v19 = vld [vmem:[#allocation6 + $0x1c] ss:$12 sps:$4 sm:$0xff]   ;;  %v685_v20 = vld [vmem:[#allocation6 + $0x18] ss:$12 sps:$4 sm:$0xff]  }
  0x2c   :  { %v686_v21 = vld [vmem:[#allocation6 + $0x4] ss:$12 sps:$4 sm:$0xff]   ;;  %v688_v22 = vld [vmem:[#allocation6] ss:$12 sps:$4 sm:$0xff]   ;;  %v691_v24 = vld [vmem:[#allocation6 + $0x168] ss:$12 sps:$4 sm:$0xff]  }
  0x2d   :  { %v689_v23 = vld [vmem:[#allocation6 + $0x16c] ss:$12 sps:$4 sm:$0xff]   ;;  %v692_v25 = vld [vmem:[#allocation6 + $0x154] ss:$12 sps:$4 sm:$0xff]   ;;  %v694_v26 = vld [vmem:[#allocation6 + $0x150] ss:$12 sps:$4 sm:$0xff]  }
  0x2e   :  { %579 = vmatmul.mubr.msk.bf16.vlgmr.msra.gmra.mxu0 %vm95_vm0, %v58_v9  ;;  %351 = vmatpush1.bf16.msra.mxu1 %v670_v10  ;;  %v695_v27 = vld [vmem:[#allocation6 + $0x13c] ss:$12 sps:$4 sm:$0xff]   ;;  %v697_v28 = vld [vmem:[#allocation6 + $0x138] ss:$12 sps:$4 sm:$0xff]   ;;  %v700_v30 = vld [vmem:[#allocation6 + $0x120] ss:$12 sps:$4 sm:$0xff]  }
  0x2f   :  { %352 = vmatprep.subr.bf16.mxu1 %v671_v11  ;;  %v698_v29 = vld [vmem:[#allocation6 + $0x124] ss:$12 sps:$4 sm:$0xff]   ;;  %v701_v31 = vld [vmem:[#allocation6 + $0x10c] ss:$12 sps:$4 sm:$0xff]   ;;  %v703_v32 = vld [vmem:[#allocation6 + $0x108] ss:$12 sps:$4 sm:$0xff]  }
  0x30   :  { %v704_v33 = vld [vmem:[#allocation6 + $0xf4] ss:$12 sps:$4 sm:$0xff]   ;;  %v706_v34 = vld [vmem:[#allocation6 + $0xf0] ss:$12 sps:$4 sm:$0xff]   ;;  %v709_v36 = vld [vmem:[#allocation6 + $0xd8] ss:$12 sps:$4 sm:$0xff]  }
  0x31   :  { %v707_v35 = vld [vmem:[#allocation6 + $0xdc] ss:$12 sps:$4 sm:$0xff]   ;;  %v710_v37 = vld [vmem:[#allocation6 + $0xc4] ss:$12 sps:$4 sm:$0xff]   ;;  %v712_v38 = vld [vmem:[#allocation6 + $0xc0] ss:$12 sps:$4 sm:$0xff]  }
  0x32   :  { %353 = vmatpush1.bf16.msra.mxu1 %v673_v12  ;;  %v713_v39 = vld [vmem:[#allocation6 + $0x170] ss:$12 sps:$4 sm:$0xff]   ;;  %v715_v41 = vld [vmem:[#allocation6 + $0x158] ss:$12 sps:$4 sm:$0xff]   ;;  %v717_v43 = vld [vmem:[#allocation6 + $0x140] ss:$12 sps:$4 sm:$0xff]  }
  0x33   :  { %354 = vmatprep.subr.bf16.mxu1 %v674_v13  ;;  %v714_v40 = vld [vmem:[#allocation6 + $0xb0] ss:$12 sps:$4 sm:$0xff]   ;;  %629 = vmatprep.subr.bf16.mxu0 %v713_v39  ;;  %v716_v42 = vld [vmem:[#allocation6 + $0x98] ss:$12 sps:$4 sm:$0xff]   ;;  %v718_v44 = vld [vmem:[#allocation6 + $0x80] ss:$12 sps:$4 sm:$0xff]  }
  0x34   :  { %630 = vmatpush3.bf16.msra.mxu0 %v714_v40  ;;  %v719_v45 = vld [vmem:[#allocation6 + $0x128] ss:$12 sps:$4 sm:$0xff]   ;;  %v721_v47 = vld [vmem:[#allocation6 + $0x110] ss:$12 sps:$4 sm:$0xff]   ;;  %v723_v49 = vld [vmem:[#allocation6 + $0xf8] ss:$12 sps:$4 sm:$0xff]  }
  0x35   :  { %631 = vmatprep.subr.bf16.mxu0 %v715_v41  ;;  %v720_v46 = vld [vmem:[#allocation6 + $0x68] ss:$12 sps:$4 sm:$0xff]   ;;  %v722_v48 = vld [vmem:[#allocation6 + $0x50] ss:$12 sps:$4 sm:$0xff]   ;;  %v724_v50 = vld [vmem:[#allocation6 + $0x38] ss:$12 sps:$4 sm:$0xff]  }
  0x36   :  { %355 = vmatpush1.bf16.msra.mxu1 %v676_v14  ;;  %v67_v53 = vsub.s32 0, %v66_v52  ;;  %v59_v54 = vld [vmem:[%s850_s3] sm:$0x3]  ;;  %v71_v55 = vsub.s32 1, %v66_v52  ;;  %v725_v4 = vld [vmem:[#allocation6 + $0xe0] ss:$12 sps:$4 sm:$0xff]  }
  0x37   :  { %356 = vmatprep.subr.bf16.mxu1 %v677_v15  ;;  %v726_v5 = vld [vmem:[#allocation6 + $0x20] ss:$12 sps:$4 sm:$0xff]   ;;  %v727_v6 = vld [vmem:[#allocation6 + $0xc8] ss:$12 sps:$4 sm:$0xff]   ;;  %v176_v8 = vld [vmem:[%s850_s3 + $0x2] sm:$0x3] }
  0x38   :  { %632 = vmatpush3.bf16.msra.mxu0 %v716_v42  ;;  %v68_v56 = vrot.slane %v59_v54, %v67_v53  ;;  %v72_v57 = vrot.slane %v59_v54, %v71_v55  ;;  %v728_v7 = vld [vmem:[#allocation6 + $0x8] ss:$12 sps:$4 sm:$0xff]   ;;  %v181_v9 = vrot.slane %v176_v8, %v67_v53  ;;  %v185_v10 = vrot.slane %v176_v8, %v71_v55 }
  0x39   :  { %633 = vmatprep.subr.bf16.mxu0 %v717_v43 }
  0x3a   :  { %357 = vmatpush1.bf16.msra.mxu1 %v679_v16 }
  0x3b   :  { %358 = vmatprep.subr.bf16.mxu1 %v680_v17 }
  0x3c   :  { %634 = vmatpush3.bf16.msra.mxu0 %v718_v44 }
  0x3d   :  { %635 = vmatprep.subr.bf16.mxu0 %v719_v45 }
  0x3e   :  { %359 = vmatpush1.bf16.msra.mxu1 %v682_v18 }
  0x3f   :  { %360 = vmatprep.subr.bf16.mxu1 %v683_v19 }
  0x40   :  { %636 = vmatpush3.bf16.msra.mxu0 %v720_v46 }
  0x41   :  { %637 = vmatprep.subr.bf16.mxu0 %v721_v47 }
  0x42   :  { %361 = vmatpush1.bf16.msra.mxu1 %v685_v20 }
  0x43   :  { %362 = vmatprep.subr.bf16.mxu1 %v686_v21 }
  0x44   :  { %638 = vmatpush3.bf16.msra.mxu0 %v722_v48 }
  0x45   :  { %639 = vmatprep.subr.bf16.mxu0 %v723_v49 }
  0x46   :  { %363 = vmatpush1.bf16.msra.mxu1 %v688_v22  ;;  %v612_v22 = vld [vmem:[%s850_s3 + $0x4] ss:$0 sm:$0xff] }
  0x47   :  { %364 = vmatprep.subr.bf16.mxu1 %v689_v23 }
  0x48   :  { %640 = vmatpush3.bf16.msra.mxu0 %v724_v50 }
  0x49   :  { %641 = vmatprep.subr.bf16.mxu0 %v725_v4 }
  0x4a   :  { %365 = vmatpush2.bf16.msra.mxu1 %v691_v24 }
  0x4b   :  { %366 = vmatprep.subr.bf16.mxu1 %v692_v25 }
  0x4c   :  { %642 = vmatpush3.bf16.msra.mxu0 %v726_v5 }
  0x4d   :  { %643 = vmatprep.subr.bf16.mxu0 %v727_v6 }
  0x4e   :  { %367 = vmatpush2.bf16.msra.mxu1 %v694_v26 }
  0x4f   :  { %368 = vmatprep.subr.bf16.mxu1 %v695_v27 }
  0x50   :  { %644 = vmatpush3.bf16.msra.mxu0 %v728_v7 }
  0x52   :  { %369 = vmatpush2.bf16.msra.mxu1 %v697_v28 }
  0x53   :  { %370 = vmatprep.subr.bf16.mxu1 %v698_v29 }
  0x56   :  { %371 = vmatpush2.bf16.msra.mxu1 %v700_v30 }
  0x57   :  { %372 = vmatprep.subr.bf16.mxu1 %v701_v31 }
  0x5a   :  { %373 = vmatpush2.bf16.msra.mxu1 %v703_v32 }
  0x5b   :  { %374 = vmatprep.subr.bf16.mxu1 %v704_v33 }
  0x5e   :  { %375 = vmatpush2.bf16.msra.mxu1 %v706_v34 }
  0x5f   :  { %376 = vmatprep.subr.bf16.mxu1 %v707_v35 }
  0x62   :  { %377 = vmatpush2.bf16.msra.mxu1 %v709_v36 }
  0x63   :  { %378 = vmatprep.subr.bf16.mxu1 %v710_v37 }
  0x66   :  { %379 = vmatpush2.bf16.msra.mxu1 %v712_v38 }
  0xee   :  { %v133_v58 = vpop.f32.mrf.mxu0 }
  0xef   :  { %v134_v59 = vadd.f32 %v133_v58, %v68_v56 }
  0xf0   :  { %v135_v60 = vpop.f32.mrf.mxu0 }
  0xf1   :  { %v136_v61 = vadd.f32 %v135_v60, %v72_v57  ;;  %v140_v62 = vmax.f32 %v134_v59, 0.0 }
  0xf2   :  { %v137_v63 = vpop.f32.mrf.mxu0 }
  0xf3   :  { %v141_v0 = vmax.f32 %v136_v61, 0.0  ;;  %v142_v3 = vpack.c.bf16 %v140_v62, %v140_v62 }
  0xf4   :  { %v138_v1 = vpop.f32.mrf.mxu0 }
  0xf5   :  { %v143_v2 = vpack.c.bf16 %v141_v0, %v141_v0 }
  0xf7   :  { %380 = vmatprep.mubr.bf16.mxu1 %v143_v2 }
  0xf8   :  { %381 = vmatmul.mubr.bf16.vlgmr.msra.gmra.mxu1 %v142_v3 }
 0x1b8   :  { %v382_v11 = vpop.f32.mrf.mxu1 }
 0x1b9   :  { %v383_v12 = vadd.f32 %v382_v11, %v181_v9 }
 0x1ba   :  { %v384_v13 = vpop.f32.mrf.mxu1 }
 0x1bb   :  { %v385_v14 = vadd.f32 %v384_v13, %v185_v10  ;;  %v389_v15 = vmax.f32 %v383_v12, 0.0 }
 0x1bc   :  { %v386_v16 = vpop.f32.mrf.mxu1 }
 0x1bd   :  { %v390_v17 = vmax.f32 %v385_v14, 0.0  ;;  %v391_v20 = vpack.c.bf16 %v389_v15, %v389_v15 }
 0x1be   :  { %v387_v18 = vpop.f32.mrf.mxu1 }
 0x1bf   :  { %v392_v19 = vpack.c.bf16 %v390_v17, %v390_v17 }
 0x1c1   :  { %560 = vmatprep.mubr.bf16.mxu0 %v392_v19 }
 0x1c2   :  { %561 = vmatmul.mubr.bf16.vlgmr.msra.gmra.mxu0 %v391_v20 }
 0x282   :  { %v645_v21 = vpop.f32.mrf.mxu0 }
 0x284   :  { %v646_v23 = vpop.f32.mrf.mxu0 }
 0x285   :  { %v647_v24 = vadd.f32 %v646_v23, %v645_v21 }
 0x286   :  { %v648_v25 = vpop.f32.mrf.mxu0 }
 0x287   :  { %v563_v26 = vadd.f32 %v647_v24, %v612_v22 }
 0x288   :  { %v649_v27 = vpop.f32.mrf.mxu0 }
 0x289   :  { %568 = vst [vmem:[%s851_s4] sm:$0xff] %v563_v26 }
 0x28a   :  { %573 = vsyncpa [#allocation3], 1 }
 0x28b   :  { %574 = vsyncpa [#allocation5], 1 }

</bundles_post_ra>
